<compile_context>
chip_gen: v7x
topology: tpu7x:2x2x1
jax: 0.10.0
libtpu: 0.0.40
codegen_flags: <defaults>
</compile_context>

<pallas_src>
import jax
import jax.numpy as jnp
from jax import lax
from jax.experimental import pallas as pl
from jax.experimental.pallas import tpu as pltpu

NUM_ELEMENTS = 118       # atomic-number vocabulary of the nn.Linear(118, 1) weight
_LANE = 128
_SUBLANE = 8


def _round_up(x, m):
    return ((x + m - 1) // m) * m


def _segsum_kernel(seg_min_ref, seg_max_ref, pa_ref, seg_ref, out_ref):
    # seg_min_ref / seg_max_ref: (n_atom_tiles,) int32 SMEM (scalar prefetch)
    #     min / max graph id of the valid atoms in each atom tile.
    # pa_ref:  (1, tn) f32   -- per-atom reference energies W[atom_types[i]] (lane-dense)
    # seg_ref: (1, tn) int32 -- graph id per atom (sentinel g_pad for padding atoms)
    # out_ref: (tg, 1) f32   -- per-graph energy block, resident accumulator across atom tiles
    j = pl.program_id(0)          # graph block
    k = pl.program_id(1)          # atom tile
    tg = out_ref.shape[0]

    @pl.when(k == 0)
    def _init():
        out_ref[...] = jnp.zeros_like(out_ref)

    g_lo = j * tg
    # Segment ids are sorted, so atom tile k only touches graph rows in
    # [seg_min[k], seg_max[k]]; skip all vector work when there is no overlap.
    overlaps = jnp.logical_and(seg_max_ref[k] >= g_lo, seg_min_ref[k] < g_lo + tg)

    @pl.when(overlaps)
    def _accumulate():
        # (tg, 1) column iota broadcast against the (1, tn) segment row by the compare.
        g_col = g_lo + lax.broadcasted_iota(jnp.int32, (tg, 1), 0)
        contrib = jnp.where(seg_ref[...] == g_col, pa_ref[...], 0.0)   # (tg, tn) f32
        out_ref[...] += jnp.sum(contrib, axis=1, keepdims=True)        # (tg, 1)  f32


def linear_reference_energy(atom_types, n_node, weight, *, tile_atoms=4096, tile_graphs=256):
    """atom_types: (n_atoms,) int, n_node: (n_graphs,) int, weight: (1, 118) f32.

    Returns (n_graphs, 1) f32, matching the PyTorch module's forward pass.
    """
    n_atoms = int(atom_types.shape[0])
    n_graphs = int(n_node.shape[0])

    # ---- tile sizing / padding (atom/lane dim multiple of 128, graph dim multiple of 8) ----
    n_pad = _round_up(max(n_atoms, 1), _LANE)
    tn = min(tile_atoms, n_pad)
    n_pad = _round_up(n_pad, tn)
    n_tiles = n_pad // tn

    g_pad = _round_up(max(n_graphs, 1), _SUBLANE)
    tg = min(tile_graphs, g_pad)
    g_pad = _round_up(g_pad, tg)

    # ---- per-atom energies gathered in the wrapper (hoists the 118-wide lookup) ----
    w_flat = weight.astype(jnp.float32).reshape(-1)
    per_atom = jnp.take(w_flat, atom_types.astype(jnp.int32))           # (n_atoms,)
    pa_row = jnp.zeros((1, n_pad), jnp.float32).at[0, :n_atoms].set(per_atom)

    # ---- sorted segment ids; sentinel g_pad for padding / out-of-range atoms ----
    offsets = jnp.cumsum(n_node.astype(jnp.int32))
    idx = jnp.arange(n_pad, dtype=jnp.int32)
    seg = jnp.searchsorted(offsets, idx, side="right").astype(jnp.int32)
    valid = (idx < n_atoms) & (seg < n_graphs)
    seg = jnp.where(valid, seg, jnp.int32(g_pad))
    seg_row = seg.reshape(1, n_pad)

    # ---- per-atom-tile graph-id ranges for the skip guard (prefetched into SMEM) ----
    seg_t = seg.reshape(n_tiles, tn)
    valid_t = valid.reshape(n_tiles, tn)
    seg_min = jnp.min(jnp.where(valid_t, seg_t, jnp.int32(2 ** 30)), axis=1).astype(jnp.int32)
    seg_max = jnp.max(jnp.where(valid_t, seg_t, jnp.int32(-1)), axis=1).astype(jnp.int32)

    grid = (g_pad // tg, n_tiles)

    cost = pl.CostEstimate(
        flops=3 * (n_pad * tg + g_pad * tn),
        transcendentals=0,
        bytes_accessed=n_pad * 8 + g_pad * 4 + n_tiles * 8,
    )

    out = pl.pallas_call(
        _segsum_kernel,
        out_shape=jax.ShapeDtypeStruct((g_pad, 1), jnp.float32),
        grid_spec=pltpu.PrefetchScalarGridSpec(
            num_scalar_prefetch=2,
            grid=grid,
            in_specs=[
                pl.BlockSpec((1, tn), lambda j, k, smin, smax: (0, k)),  # per-atom energies
                pl.BlockSpec((1, tn), lambda j, k, smin, smax: (0, k)),  # segment ids
            ],
            out_specs=pl.BlockSpec((tg, 1), lambda j, k, smin, smax: (j, 0)),
        ),
        compiler_params=pltpu.CompilerParams(
            dimension_semantics=("parallel", "arbitrary"),
            vmem_limit_bytes=32 * 1024 * 1024,
        ),
        cost_estimate=cost,
    )(seg_min, seg_max, pa_row, seg_row)

    return out[:n_graphs]


def _reference(atom_types, n_node, weight):
    n_graphs = int(n_node.shape[0])
    n_atoms = int(atom_types.shape[0])
    one_hot = jax.nn.one_hot(atom_types, NUM_ELEMENTS, dtype=jnp.float32)
    seg_ids = jnp.repeat(jnp.arange(n_graphs), n_node, total_repeat_length=n_atoms)
    reduced = jax.ops.segment_sum(one_hot, seg_ids, num_segments=n_graphs)
    return reduced @ weight.astype(jnp.float32).T


if __name__ == "__main__":
    key = jax.random.PRNGKey(0)
    k_w, k_at1, k_at2 = jax.random.split(key, 3)

    # nn.Linear(118, 1, bias=False) default init: uniform(-1/sqrt(118), 1/sqrt(118)).
    bound = 1.0 / (NUM_ELEMENTS ** 0.5)
    weight = jax.random.uniform(
        k_w, (1, NUM_ELEMENTS), minval=-bound, maxval=bound, dtype=jnp.float32
    )

    # ---- check 1: tiny batch (2 graphs, 8 atoms), single grid point ----
    n_node1 = jnp.array([5, 3], dtype=jnp.int32)
    atom_types1 = jax.random.randint(k_at1, (8,), 0, NUM_ELEMENTS, dtype=jnp.int32)
    out1 = jax.block_until_ready(linear_reference_energy(atom_types1, n_node1, weight))
    ref1 = _reference(atom_types1, n_node1, weight)
    assert out1.shape == (2, 1), out1.shape
    assert jnp.allclose(out1, ref1, atol=1e-5), (out1, ref1)

    # ---- check 2: multi-tile / multi-block grid (exercises skip guard, sentinel,
    #               empty graphs, partial last tile) ----
    n_node2 = jnp.array(
        [7, 31, 0, 24, 12, 5, 40, 3, 18, 9, 27, 2, 0, 15, 22, 11, 30, 8, 19, 17],
        dtype=jnp.int32,
    )  # sums to 300 atoms across 20 graphs (two of them empty)
    atom_types2 = jax.random.randint(k_at2, (300,), 0, NUM_ELEMENTS, dtype=jnp.int32)
    out2 = jax.block_until_ready(
        linear_reference_energy(atom_types2, n_node2, weight, tile_atoms=128, tile_graphs=8)
    )
    ref2 = _reference(atom_types2, n_node2, weight)
    assert out2.shape == (20, 1), out2.shape
    assert jnp.allclose(out2, ref2, atol=1e-5), (out2, ref2)

    print("KERNEL_OK")
</pallas_src>

<mosaic_0001>
module attributes {stable_mosaic.version = 11 : i64} {
  func.func @_segsum_kernel(%arg0: i32, %arg1: i32, %arg2: memref<1xi32, #tpu.memory_space<smem>>, %arg3: memref<1xi32, #tpu.memory_space<smem>>, %arg4: memref<1x128xf32, #tpu.memory_space<vmem>>, %arg5: memref<1x128xi32, #tpu.memory_space<vmem>>, %arg6: memref<8x1xf32, #tpu.memory_space<vmem>>) attributes {dimension_semantics = [#tpu.dimension_semantics<parallel>, #tpu.dimension_semantics<arbitrary>], iteration_bounds = array<i64: 1, 1>, scalar_prefetch = 2 : i64, scratch_operands = 0 : i64, tpu.core_type = #tpu.core_type<tc>, window_params = [{transform_indices = @transform_0, window_bounds = array<i64: 1, 128>}, {transform_indices = @transform_1, window_bounds = array<i64: 1, 128>}, {transform_indices = @transform_2, window_bounds = array<i64: 8, 1>}]} {
    %c0_i32 = arith.constant 0 : i32
    %0 = arith.cmpi eq, %arg1, %c0_i32 : i32
    %1 = arith.extui %0 : i1 to i32
    %c0_i32_0 = arith.constant 0 : i32
    %2 = arith.cmpi ne, %1, %c0_i32_0 : i32
    scf.if %2 {
      %cst = arith.constant 0.000000e+00 : f32
      %14 = vector.broadcast %cst : f32 to vector<8x1xf32>
      %c0 = arith.constant 0 : index
      %c0_3 = arith.constant 0 : index
      %15 = vector.load %arg6[%c0, %c0_3] : memref<8x1xf32, #tpu.memory_space<vmem>>, vector<8x1xf32>
      tpu.vector_store %arg6[%c0, %c0_3], %14 {strides = array<i32>} : memref<8x1xf32, #tpu.memory_space<vmem>>, vector<8x1xf32>,
    } else {
    }
    %c8_i32 = arith.constant 8 : i32
    %3 = arith.muli %arg0, %c8_i32 : i32
    %4 = arith.index_cast %arg1 : i32 to index
    %5 = memref.load %arg3[%4] : memref<1xi32, #tpu.memory_space<smem>>
    %6 = arith.cmpi sge, %5, %3 : i32
    %7 = arith.index_cast %arg1 : i32 to index
    %8 = memref.load %arg2[%7] : memref<1xi32, #tpu.memory_space<smem>>
    %c8_i32_1 = arith.constant 8 : i32
    %9 = arith.addi %3, %c8_i32_1 : i32
    %10 = arith.cmpi slt, %8, %9 : i32
    %11 = arith.andi %6, %10 : i1
    %12 = arith.extui %11 : i1 to i32
    %c0_i32_2 = arith.constant 0 : i32
    %13 = arith.cmpi ne, %12, %c0_i32_2 : i32
    scf.if %13 {
      %14 = tpu.iota {dimensions = array<i32: 0>} : vector<8x1xi32>
      %15 = vector.broadcast %3 : i32 to vector<8x1xi32>
      %16 = arith.addi %15, %14 : vector<8x1xi32>
      %c0 = arith.constant 0 : index
      %c0_3 = arith.constant 0 : index
      %17 = vector.load %arg5[%c0, %c0_3] : memref<1x128xi32, #tpu.memory_space<vmem>>, vector<1x128xi32>
      %18 = vector.broadcast %17 : vector<1x128xi32> to vector<8x128xi32>
      %19 = vector.broadcast %16 : vector<8x1xi32> to vector<8x128xi32>
      %20 = arith.cmpi eq, %18, %19 : vector<8x128xi32>
      %c0_4 = arith.constant 0 : index
      %c0_5 = arith.constant 0 : index
      %21 = vector.load %arg4[%c0_4, %c0_5] : memref<1x128xf32, #tpu.memory_space<vmem>>, vector<1x128xf32>
      %cst = arith.constant 0.000000e+00 : f32
      %22 = vector.shape_cast %21 : vector<1x128xf32> to vector<1x128xf32>
      %23 = vector.broadcast %22 : vector<1x128xf32> to vector<8x128xf32>
      %24 = vector.broadcast %cst : f32 to vector<8x128xf32>
      %25 = arith.select %20, %23, %24 : vector<8x128xi1>, vector<8x128xf32>
      %c0_6 = arith.constant 0 : index
      %c0_7 = arith.constant 0 : index
      %26 = vector.load %arg6[%c0_6, %c0_7] : memref<8x1xf32, #tpu.memory_space<vmem>>, vector<8x1xf32>
      %cst_8 = arith.constant dense<0.000000e+00> : vector<8xf32>
      %27 = vector.multi_reduction <add>, %25, %cst_8 [1] : vector<8x128xf32> to vector<8xf32>
      %28 = vector.shape_cast %27 : vector<8xf32> to vector<8x1xf32>
      %29 = arith.addf %26, %28 : vector<8x1xf32>
      %c0_9 = arith.constant 0 : index
      %c0_10 = arith.constant 0 : index
      %30 = vector.load %arg6[%c0_9, %c0_10] : memref<8x1xf32, #tpu.memory_space<vmem>>, vector<8x1xf32>
      tpu.vector_store %arg6[%c0_9, %c0_10], %29 {strides = array<i32>} : memref<8x1xf32, #tpu.memory_space<vmem>>, vector<8x1xf32>,
    } else {
    }
    return
  }
  func.func @transform_0(%arg0: i32, %arg1: i32, %arg2: memref<1xi32, #tpu.memory_space<smem>>, %arg3: memref<1xi32, #tpu.memory_space<smem>>) -> (i32, i32) {
    %c0_i32 = arith.constant 0 : i32
    %c0_i32_0 = arith.constant 0 : i32
    return %c0_i32, %arg1 : i32, i32
  }
  func.func @transform_1(%arg0: i32, %arg1: i32, %arg2: memref<1xi32, #tpu.memory_space<smem>>, %arg3: memref<1xi32, #tpu.memory_space<smem>>) -> (i32, i32) {
    %c0_i32 = arith.constant 0 : i32
    %c0_i32_0 = arith.constant 0 : i32
    return %c0_i32, %arg1 : i32, i32
  }
  func.func @transform_2(%arg0: i32, %arg1: i32, %arg2: memref<1xi32, #tpu.memory_space<smem>>, %arg3: memref<1xi32, #tpu.memory_space<smem>>) -> (i32, i32) {
    %c0_i32 = arith.constant 0 : i32
    %c0_i32_0 = arith.constant 0 : i32
    return %arg0, %c0_i32 : i32, i32
  }
}

</mosaic_0001>

<bundles_post_ra>
// kernel: tpu_custom_call.1
= control target key start
LH: loop header
LB: loop body
LE: loop exit
PB: predicated region body
PF: predicated region fallthrough
CT: control target
= control target key end

     0   :  { %vm19_vm0 = vcmask 7168   ;;  %v62_v0 = vmov 0.0   ;;  %s111_s0 = inlined_call_operand.<no memory space> [shape: s32[1], index: 0, kind: input, shape index: {}]   ;;  %s112_s1 = inlined_call_operand.<no memory space> [shape: s32[1], index: 1, kind: input, shape index: {}]   ;;  %s113_s2 = inlined_call_operand.vmem [shape: f32[1,128], index: 2, kind: input, shape index: {}]   ;;  %s114_s3 = inlined_call_operand.vmem [shape: s32[1,128], index: 3, kind: input, shape index: {}]   ;;  %s115_s4 = inlined_call_operand.vmem [shape: f32[8,1], index: 4, kind: output, shape index: {}]  }
   0x1   :  { %20 = vst.msk [vmem:[%s115_s4] sm:$0xff] %vm19_vm0, %v62_v0  ;;  %p23_p0 = scmp.ge.s32.totalorder %s112_s1, 0  ;;  %p26_p1 = scmp.lt.s32.totalorder %s111_s0, 8 }
   0x3   :  { %p27_p2 = pnand %p26_p1, %p23_p0 }
   0x4   :  { %v31_v1 = vlaneseq (!%p27_p2)  ;;  %v59_v2 = vld [vmem:[%s114_s3] ss:$0 sm:$0xff] (!%p27_p2) }
   0x5   :  { %30 = sbr.rel (%p27_p2) target bundleno = 155 (0x9b), region = 17  ;;  %v60_v4 = vld [vmem:[%s113_s2] ss:$0 sm:$0xff] (!%p27_p2) }
   0x6   :  { %v32_v3 = vshrl.u32 (!%p27_p2), %v31_v1, 7 }
   0x8   :  { %vm40_vm1 = vcmp.eq.s32.totalorder (!%p27_p2), %v59_v2, %v32_v3  ;;  %v49_v6 = vld [vmem:[%s115_s4] sm:$0xff] (!%p27_p2) }
   0x9   :  { %v48_v5 = vsel (!%p27_p2), %vm40_vm1, %v60_v4, 0.0 }
   0xa   :  { %50 = vadd.xlane.f32.xlu0 (!%p27_p2), %v48_v5 }
  0x97   :  { %v51_v7 = vpop.xlane.xlu0 %50 }
  0x98   :  { %v52_v8 = vadd.f32 %v51_v7, %v49_v6 }
  0x9a   :  { %54 = vst.msk [vmem:[%s115_s4] sm:$0xff] %vm19_vm0, %v52_v8 }
  0x9b PF:  {}

</bundles_post_ra>
